<compile_context>
chip_gen: v7x
topology: tpu7x:2x2x1
jax: 0.10.0
libtpu: 0.0.40
codegen_flags: <defaults>
</compile_context>

<pallas_src>
import functools

import jax
import jax.numpy as jnp
import numpy as np
from jax.experimental import pallas as pl
from jax.experimental.pallas import tpu as pltpu

EPS = 1e-5


# ----------------------------------------------------------------------------
# Kernel 1: fused [concat -> 1x1 conv -> BN(inference) -> ReLU], channel-major.
#   h[n, :, m] = relu(Wx' @ x[n, :, m] + Wy' @ y[n, :, m] + shift)
# Wx'/Wy' are the BN-folded halves of the 1x1 conv weight (concat never materializes).
# Output is (N, Cmid, H*W): spatial on lanes (lane-dense stores), channels on sublanes.
# ----------------------------------------------------------------------------
def _conv1x1_bn_relu_kernel(x_ref, y_ref, wx_ref, wy_ref, shift_ref, o_ref):
    acc = jnp.dot(wx_ref[...], x_ref[0], preferred_element_type=jnp.float32)
    acc = acc + jnp.dot(wy_ref[...], y_ref[0], preferred_element_type=jnp.float32)
    acc = acc + shift_ref[...]
    o_ref[0] = jnp.maximum(acc, 0.0).astype(o_ref.dtype)


def conv1x1_bn_relu(x_cm, y_cm, wx, wy, shift, *, tile_m=2048):
    N, C1, M = x_cm.shape
    C2 = y_cm.shape[1]
    Cm = wx.shape[0]
    tm = M if M <= tile_m else tile_m
    if tm != M and tm % 128 != 0:      # lane-dim block must be 128-multiple or full dim
        tm = M
    grid = (N, pl.cdiv(M, tm))
    return pl.pallas_call(
        _conv1x1_bn_relu_kernel,
        out_shape=jax.ShapeDtypeStruct((N, Cm, M), x_cm.dtype),
        grid_spec=pltpu.PrefetchScalarGridSpec(
            num_scalar_prefetch=0,
            grid=grid,
            in_specs=[
                pl.BlockSpec((1, C1, tm), lambda n, t: (n, 0, t)),
                pl.BlockSpec((1, C2, tm), lambda n, t: (n, 0, t)),
                pl.BlockSpec((Cm, C1), lambda n, t: (0, 0)),
                pl.BlockSpec((Cm, C2), lambda n, t: (0, 0)),
                pl.BlockSpec((Cm, 1), lambda n, t: (0, 0)),
            ],
            out_specs=pl.BlockSpec((1, Cm, tm), lambda n, t: (n, 0, t)),
        ),
        compiler_params=pltpu.CompilerParams(
            dimension_semantics=("parallel", "parallel")),
    )(x_cm, y_cm, wx, wy, shift)


# ----------------------------------------------------------------------------
# Kernel 2: ConvTranspose2d(k=3, s=2, p=1, op=1) + BN(inference), phase-decomposed.
# Output position (2r+dr, 2c+dc) only depends on h[r+sr, c+sc], sr,sc in {0,1}, with a
# per-(phase, shift) channel matrix.  The grid iterates (batch, phase): the phase weight
# block is selected purely by the BlockSpec index_map (no traced control flow), and the
# 4 shifted views are static lane-offset slices of the flat halo-padded input.  Taps that
# do not exist for a phase carry zero matrices (negligible extra MXU work; the kernel is
# store/DMA bound), keeping every grid step identical and fully static.
# ----------------------------------------------------------------------------
def _deconv_phase_kernel(hf_ref, w_ref, shift_ref, o_ref, *, Wp, L):
    acc = None
    for sr in range(2):
        for sc in range(2):
            off = sr * Wp + sc
            g = hf_ref[0, :, off:off + L]                      # (Cin, L)
            c = jnp.dot(w_ref[0, sr, sc], g, preferred_element_type=jnp.float32)
            acc = c if acc is None else acc + c
    o_ref[0, 0] = (acc + shift_ref[...]).astype(o_ref.dtype)


def deconv3x3s2_bn(hf, w_phase, shift, *, H, W):
    N, Cm, Lext = hf.shape
    Co = w_phase.shape[3]
    Wp = W + 1
    L = (H + 1) * Wp
    kernel = functools.partial(_deconv_phase_kernel, Wp=Wp, L=L)
    return pl.pallas_call(
        kernel,
        out_shape=jax.ShapeDtypeStruct((N, 4, Co, L), jnp.float32),
        grid_spec=pltpu.PrefetchScalarGridSpec(
            num_scalar_prefetch=0,
            grid=(N, 4),                                        # 4N parallel steps
            in_specs=[
                pl.BlockSpec((1, Cm, Lext), lambda n, p: (n, 0, 0)),
                pl.BlockSpec((1, 2, 2, Co, Cm), lambda n, p: (p, 0, 0, 0, 0)),
                pl.BlockSpec((Co, 1), lambda n, p: (0, 0)),
            ],
            out_specs=pl.BlockSpec((1, 1, Co, L), lambda n, p: (n, p, 0, 0)),
        ),
        compiler_params=pltpu.CompilerParams(
            dimension_semantics=("parallel", "parallel")),
    )(hf, w_phase, shift)


# ----------------------------------------------------------------------------
# Wrapper: BN folding, phase-weight construction, layout plumbing.
# ----------------------------------------------------------------------------
def _fold_bn(gamma, beta, mean, var, bias):
    scale = gamma * jax.lax.rsqrt(var + EPS)
    shift = scale * (bias - mean) + beta
    return scale, shift


def _kh_of(d, s):
    # output-parity d (0=even, 1=odd) and input shift s -> transposed-conv kernel index
    # (None = this (parity, shift) pair receives no contribution).
    if d == 0:
        return 1 if s == 0 else None
    return 0 if s == 1 else 2


def _phase_weights(wt, scale2):
    # wt: ConvTranspose2d weight (Cin, Cout, 3, 3).  Returns (4, 2, 2, Cout, Cin) where
    # [2*dr+dc, sr, sc] is the BN-folded matrix multiplying h[r+sr, c+sc] for output
    # position (2r+dr, 2c+dc); taps that don't exist for a phase are zero.
    wt_t = jnp.transpose(wt, (2, 3, 1, 0)) * scale2[None, None, :, None]  # (3,3,Co,Ci)
    Co, Ci = wt_t.shape[2], wt_t.shape[3]
    phases = []
    for dr in range(2):
        for dc in range(2):
            rows = []
            for sr in range(2):
                cols = []
                for sc in range(2):
                    kh, kw = _kh_of(dr, sr), _kh_of(dc, sc)
                    if kh is None or kw is None:
                        cols.append(jnp.zeros((Co, Ci), jnp.float32))
                    else:
                        cols.append(wt_t[kh, kw])
                rows.append(jnp.stack(cols, 0))
            phases.append(jnp.stack(rows, 0))
    return jnp.stack(phases, 0)                                  # (4, 2, 2, Co, Ci)


def block_c_forward(params, x, y, *, compute_dtype=jnp.bfloat16, tile_m=2048):
    N, C1, H, W = x.shape
    C2 = y.shape[1]
    M = H * W
    Cm = params["w1"].shape[0]

    # --- stage 1: concat + 1x1 conv + BN + ReLU (single fused kernel) ---------------
    scale1, shift1 = _fold_bn(params["bn1_gamma"], params["bn1_beta"],
                              params["bn1_mean"], params["bn1_var"], params["b1"])
    w1f = params["w1"] * scale1[:, None]                         # BN folded into weights
    wx = w1f[:, :C1].astype(compute_dtype)
    wy = w1f[:, C1:].astype(compute_dtype)
    x_cm = x.reshape(N, C1, M).astype(compute_dtype)             # free reshape (NCHW-flat)
    y_cm = y.reshape(N, C2, M).astype(compute_dtype)
    h = conv1x1_bn_relu(x_cm, y_cm, wx, wy, shift1[:, None], tile_m=tile_m)

    # --- stage 2: phase-decomposed ConvTranspose2d + BN ------------------------------
    Hp, Wp = H + 1, W + 1
    L = Hp * Wp
    # zero-pad one row/col (bottom/right boundary of the transposed conv), flatten, and
    # add Wp+1 flat zeros so all 4 shifted views are plain static lane-offset slices.
    hpad = jnp.pad(h.reshape(N, Cm, H, W), ((0, 0), (0, 0), (0, 1), (0, 1)))
    hf = jnp.pad(hpad.reshape(N, Cm, L), ((0, 0), (0, 0), (0, Wp + 1)))

    scale2, shift2 = _fold_bn(params["bn2_gamma"], params["bn2_beta"],
                              params["bn2_mean"], params["bn2_var"], params["bt"])
    w_phase = _phase_weights(params["wt"], scale2).astype(compute_dtype)
    Co = w_phase.shape[3]

    out_ph = deconv3x3s2_bn(hf, w_phase, shift2[:, None], H=H, W=W)  # (N, 4, Co, L)

    # phase-major -> NCHW: pure layout plumbing (the kernels stayed lane-dense).
    out_ph = out_ph.reshape(N, 2, 2, Co, Hp, Wp)[:, :, :, :, :H, :W]
    out = jnp.transpose(out_ph, (0, 3, 4, 1, 5, 2)).reshape(N, Co, 2 * H, 2 * W)
    # TODO(synk): train-mode Dropout2d(p=0.1) / batch-statistics BatchNorm are not
    # implemented; eval-mode semantics (identity dropout, running stats) are used.
    return out


# ----------------------------------------------------------------------------
# Deterministic parameter init + pure-JAX reference for validation.
# The reference mirrors the kernels' bf16 quantization (folded-BN bf16 weights, bf16
# activations, f32 accumulation) so the comparison isolates kernel/indexing bugs.
# ----------------------------------------------------------------------------
def init_params(key, in_channel, out_channel):
    ks = jax.random.split(key, 12)
    return {
        "w1": 0.1 * jax.random.normal(ks[0], (out_channel, in_channel), jnp.float32),
        "b1": 0.1 * jax.random.normal(ks[1], (out_channel,), jnp.float32),
        "bn1_gamma": 1.0 + 0.1 * jax.random.normal(ks[2], (out_channel,), jnp.float32),
        "bn1_beta": 0.1 * jax.random.normal(ks[3], (out_channel,), jnp.float32),
        "bn1_mean": 0.05 * jax.random.normal(ks[4], (out_channel,), jnp.float32),
        "bn1_var": jnp.abs(1.0 + 0.1 * jax.random.normal(ks[5], (out_channel,), jnp.float32)),
        "wt": 0.1 * jax.random.normal(ks[6], (out_channel, out_channel, 3, 3), jnp.float32),
        "bt": 0.1 * jax.random.normal(ks[7], (out_channel,), jnp.float32),
        "bn2_gamma": 1.0 + 0.1 * jax.random.normal(ks[8], (out_channel,), jnp.float32),
        "bn2_beta": 0.1 * jax.random.normal(ks[9], (out_channel,), jnp.float32),
        "bn2_mean": 0.05 * jax.random.normal(ks[10], (out_channel,), jnp.float32),
        "bn2_var": jnp.abs(1.0 + 0.1 * jax.random.normal(ks[11], (out_channel,), jnp.float32)),
    }


def reference(params, x, y, compute_dtype=jnp.bfloat16):
    scale1, shift1 = _fold_bn(params["bn1_gamma"], params["bn1_beta"],
                              params["bn1_mean"], params["bn1_var"], params["b1"])
    w1f = (params["w1"] * scale1[:, None]).astype(compute_dtype)
    xcat = jnp.concatenate([x, y], axis=1).astype(compute_dtype)
    z = jnp.einsum("oc,nchw->nohw", w1f, xcat, preferred_element_type=jnp.float32)
    h = jnp.maximum(z + shift1[None, :, None, None], 0.0).astype(compute_dtype)

    scale2, shift2 = _fold_bn(params["bn2_gamma"], params["bn2_beta"],
                              params["bn2_mean"], params["bn2_var"], params["bt"])
    wt = params["wt"]
    conv_w = jnp.transpose(wt[:, :, ::-1, ::-1], (1, 0, 2, 3))   # OIHW, spatially flipped
    conv_w = (conv_w * scale2[:, None, None, None]).astype(compute_dtype)
    t = jax.lax.conv_general_dilated(
        h, conv_w, window_strides=(1, 1), padding=[(1, 2), (1, 2)],
        lhs_dilation=(2, 2), dimension_numbers=("NCHW", "OIHW", "NCHW"),
        preferred_element_type=jnp.float32)
    return t + shift2[None, :, None, None]


if __name__ == "__main__":
    N, C1, C2, H, W = 2, 4, 4, 16, 16
    in_channel, out_channel = C1 + C2, 8

    key = jax.random.PRNGKey(0)
    kx, ky, kp = jax.random.split(key, 3)
    x = jax.random.normal(kx, (N, C1, H, W), jnp.float32)
    y = jax.random.normal(ky, (N, C2, H, W), jnp.float32)
    params = init_params(kp, in_channel, out_channel)

    out = jax.block_until_ready(jax.jit(block_c_forward)(params, x, y))
    ref = jax.block_until_ready(jax.jit(reference)(params, x, y))

    assert out.shape == (N, out_channel, 2 * H, 2 * W), out.shape
    np.testing.assert_allclose(np.asarray(out), np.asarray(ref), rtol=1e-2, atol=1e-2)

    print("KERNEL_OK")
</pallas_src>

<mosaic_0001>
module attributes {stable_mosaic.version = 11 : i64} {
  func.func @_conv1x1_bn_relu_kernel(%arg0: i32, %arg1: i32, %arg2: memref<1x4x256xbf16, #tpu.memory_space<vmem>>, %arg3: memref<1x4x256xbf16, #tpu.memory_space<vmem>>, %arg4: memref<8x4xbf16, #tpu.memory_space<vmem>>, %arg5: memref<8x4xbf16, #tpu.memory_space<vmem>>, %arg6: memref<8x1xf32, #tpu.memory_space<vmem>>, %arg7: memref<1x8x256xbf16, #tpu.memory_space<vmem>>) attributes {dimension_semantics = [#tpu.dimension_semantics<parallel>, #tpu.dimension_semantics<parallel>], iteration_bounds = array<i64: 2, 1>, scalar_prefetch = 0 : i64, scratch_operands = 0 : i64, tpu.core_type = #tpu.core_type<tc>, window_params = [{transform_indices = @transform_0, window_bounds = array<i64: 1, 4, 256>}, {transform_indices = @transform_1, window_bounds = array<i64: 1, 4, 256>}, {pipeline_mode = #tpu.pipeline_mode<synchronous>, transform_indices = @transform_2, window_bounds = array<i64: 8, 4>}, {pipeline_mode = #tpu.pipeline_mode<synchronous>, transform_indices = @transform_3, window_bounds = array<i64: 8, 4>}, {pipeline_mode = #tpu.pipeline_mode<synchronous>, transform_indices = @transform_4, window_bounds = array<i64: 8, 1>}, {transform_indices = @transform_5, window_bounds = array<i64: 1, 8, 256>}]} {
    %c0 = arith.constant 0 : index
    %c0_0 = arith.constant 0 : index
    %0 = vector.load %arg4[%c0, %c0_0] : memref<8x4xbf16, #tpu.memory_space<vmem>>, vector<8x4xbf16>
    %c0_1 = arith.constant 0 : index
    %c0_2 = arith.constant 0 : index
    %c0_3 = arith.constant 0 : index
    %1 = vector.load %arg2[%c0_1, %c0_2, %c0_3] : memref<1x4x256xbf16, #tpu.memory_space<vmem>>, vector<1x4x256xbf16>
    %2 = vector.shape_cast %1 : vector<1x4x256xbf16> to vector<4x256xbf16>
    %cst = arith.constant dense<0.000000e+00> : vector<8x256xf32>
    %3 = tpu.matmul %0, %2, %cst {dimension_numbers = #tpu.dot_dimension_numbers<[1], [0], [0], [1], [0, 0, 1, 1], [], []>} : vector<8x4xbf16>, vector<4x256xbf16>, vector<8x256xf32> -> vector<8x256xf32>
    %c0_4 = arith.constant 0 : index
    %c0_5 = arith.constant 0 : index
    %4 = vector.load %arg5[%c0_4, %c0_5] : memref<8x4xbf16, #tpu.memory_space<vmem>>, vector<8x4xbf16>
    %c0_6 = arith.constant 0 : index
    %c0_7 = arith.constant 0 : index
    %c0_8 = arith.constant 0 : index
    %5 = vector.load %arg3[%c0_6, %c0_7, %c0_8] : memref<1x4x256xbf16, #tpu.memory_space<vmem>>, vector<1x4x256xbf16>
    %6 = vector.shape_cast %5 : vector<1x4x256xbf16> to vector<4x256xbf16>
    %cst_9 = arith.constant dense<0.000000e+00> : vector<8x256xf32>
    %7 = tpu.matmul %4, %6, %cst_9 {dimension_numbers = #tpu.dot_dimension_numbers<[1], [0], [0], [1], [0, 0, 1, 1], [], []>} : vector<8x4xbf16>, vector<4x256xbf16>, vector<8x256xf32> -> vector<8x256xf32>
    %8 = arith.addf %3, %7 : vector<8x256xf32>
    %c0_10 = arith.constant 0 : index
    %c0_11 = arith.constant 0 : index
    %9 = vector.load %arg6[%c0_10, %c0_11] : memref<8x1xf32, #tpu.memory_space<vmem>>, vector<8x1xf32>
    %10 = vector.broadcast %9 : vector<8x1xf32> to vector<8x256xf32>
    %11 = arith.addf %8, %10 : vector<8x256xf32>
    %cst_12 = arith.constant 0.000000e+00 : f32
    %12 = vector.broadcast %cst_12 : f32 to vector<8x256xf32>
    %13 = arith.maximumf %11, %12 : vector<8x256xf32>
    %14 = arith.truncf %13 : vector<8x256xf32> to vector<8x256xbf16>
    %c0_13 = arith.constant 0 : index
    %c0_14 = arith.constant 0 : index
    %c0_15 = arith.constant 0 : index
    %15 = vector.load %arg7[%c0_13, %c0_14, %c0_15] : memref<1x8x256xbf16, #tpu.memory_space<vmem>>, vector<1x8x256xbf16>
    %16 = vector.shape_cast %15 : vector<1x8x256xbf16> to vector<8x256xbf16>
    %17 = vector.shape_cast %14 : vector<8x256xbf16> to vector<1x8x256xbf16>
    tpu.vector_store %arg7[%c0_13, %c0_14, %c0_15], %17 {strides = array<i32>} : memref<1x8x256xbf16, #tpu.memory_space<vmem>>, vector<1x8x256xbf16>,
    return
  }
  func.func @transform_0(%arg0: i32, %arg1: i32) -> (i32, i32, i32) {
    %c0_i32 = arith.constant 0 : i32
    %c0_i32_0 = arith.constant 0 : i32
    return %arg0, %c0_i32, %arg1 : i32, i32, i32
  }
  func.func @transform_1(%arg0: i32, %arg1: i32) -> (i32, i32, i32) {
    %c0_i32 = arith.constant 0 : i32
    %c0_i32_0 = arith.constant 0 : i32
    return %arg0, %c0_i32, %arg1 : i32, i32, i32
  }
  func.func @transform_2(%arg0: i32, %arg1: i32) -> (i32, i32) {
    %c0_i32 = arith.constant 0 : i32
    %c0_i32_0 = arith.constant 0 : i32
    %c0_i32_1 = arith.constant 0 : i32
    return %c0_i32, %c0_i32_0 : i32, i32
  }
  func.func @transform_3(%arg0: i32, %arg1: i32) -> (i32, i32) {
    %c0_i32 = arith.constant 0 : i32
    %c0_i32_0 = arith.constant 0 : i32
    %c0_i32_1 = arith.constant 0 : i32
    return %c0_i32, %c0_i32_0 : i32, i32
  }
  func.func @transform_4(%arg0: i32, %arg1: i32) -> (i32, i32) {
    %c0_i32 = arith.constant 0 : i32
    %c0_i32_0 = arith.constant 0 : i32
    %c0_i32_1 = arith.constant 0 : i32
    return %c0_i32, %c0_i32_0 : i32, i32
  }
  func.func @transform_5(%arg0: i32, %arg1: i32) -> (i32, i32, i32) {
    %c0_i32 = arith.constant 0 : i32
    %c0_i32_0 = arith.constant 0 : i32
    return %arg0, %c0_i32, %arg1 : i32, i32, i32
  }
}

module attributes {stable_mosaic.version = 11 : i64} {
  func.func @_deconv_phase_kernel(%arg0: i32, %arg1: i32, %arg2: memref<1x8x307xbf16, #tpu.memory_space<vmem>>, %arg3: memref<1x2x2x8x8xbf16, #tpu.memory_space<vmem>>, %arg4: memref<8x1xf32, #tpu.memory_space<vmem>>, %arg5: memref<1x1x8x289xf32, #tpu.memory_space<vmem>>) attributes {dimension_semantics = [#tpu.dimension_semantics<parallel>, #tpu.dimension_semantics<parallel>], iteration_bounds = array<i64: 2, 4>, scalar_prefetch = 0 : i64, scratch_operands = 0 : i64, tpu.core_type = #tpu.core_type<tc>, window_params = [{transform_indices = @transform_0, window_bounds = array<i64: 1, 8, 307>}, {transform_indices = @transform_1, window_bounds = array<i64: 1, 2, 2, 8, 8>}, {pipeline_mode = #tpu.pipeline_mode<synchronous>, transform_indices = @transform_2, window_bounds = array<i64: 8, 1>}, {transform_indices = @transform_3, window_bounds = array<i64: 1, 1, 8, 289>}]} {
    %c0 = arith.constant 0 : index
    %c0_0 = arith.constant 0 : index
    %c0_1 = arith.constant 0 : index
    %0 = vector.load %arg2[%c0, %c0_0, %c0_1] : memref<1x8x307xbf16, #tpu.memory_space<vmem>>, vector<1x8x289xbf16>
    %1 = vector.shape_cast %0 : vector<1x8x289xbf16> to vector<8x289xbf16>
    %c0_2 = arith.constant 0 : index
    %c0_3 = arith.constant 0 : index
    %c0_4 = arith.constant 0 : index
    %c0_5 = arith.constant 0 : index
    %c0_6 = arith.constant 0 : index
    %2 = vector.load %arg3[%c0_2, %c0_3, %c0_4, %c0_5, %c0_6] : memref<1x2x2x8x8xbf16, #tpu.memory_space<vmem>>, vector<1x1x1x8x8xbf16>
    %3 = vector.shape_cast %2 : vector<1x1x1x8x8xbf16> to vector<8x8xbf16>
    %cst = arith.constant dense<0.000000e+00> : vector<8x289xf32>
    %4 = tpu.matmul %3, %1, %cst {dimension_numbers = #tpu.dot_dimension_numbers<[1], [0], [0], [1], [0, 0, 1, 1], [], []>} : vector<8x8xbf16>, vector<8x289xbf16>, vector<8x289xf32> -> vector<8x289xf32>
    %c0_7 = arith.constant 0 : index
    %c0_8 = arith.constant 0 : index
    %c1 = arith.constant 1 : index
    %5 = vector.load %arg2[%c0_7, %c0_8, %c1] : memref<1x8x307xbf16, #tpu.memory_space<vmem>>, vector<1x8x289xbf16>
    %6 = vector.shape_cast %5 : vector<1x8x289xbf16> to vector<8x289xbf16>
    %c0_9 = arith.constant 0 : index
    %c0_10 = arith.constant 0 : index
    %c1_11 = arith.constant 1 : index
    %c0_12 = arith.constant 0 : index
    %c0_13 = arith.constant 0 : index
    %7 = vector.load %arg3[%c0_9, %c0_10, %c1_11, %c0_12, %c0_13] : memref<1x2x2x8x8xbf16, #tpu.memory_space<vmem>>, vector<1x1x1x8x8xbf16>
    %8 = vector.shape_cast %7 : vector<1x1x1x8x8xbf16> to vector<8x8xbf16>
    %cst_14 = arith.constant dense<0.000000e+00> : vector<8x289xf32>
    %9 = tpu.matmul %8, %6, %cst_14 {dimension_numbers = #tpu.dot_dimension_numbers<[1], [0], [0], [1], [0, 0, 1, 1], [], []>} : vector<8x8xbf16>, vector<8x289xbf16>, vector<8x289xf32> -> vector<8x289xf32>
    %10 = arith.addf %4, %9 : vector<8x289xf32>
    %c0_15 = arith.constant 0 : index
    %c0_16 = arith.constant 0 : index
    %c17 = arith.constant 17 : index
    %11 = vector.load %arg2[%c0_15, %c0_16, %c17] : memref<1x8x307xbf16, #tpu.memory_space<vmem>>, vector<1x8x289xbf16>
    %12 = vector.shape_cast %11 : vector<1x8x289xbf16> to vector<8x289xbf16>
    %c0_17 = arith.constant 0 : index
    %c1_18 = arith.constant 1 : index
    %c0_19 = arith.constant 0 : index
    %c0_20 = arith.constant 0 : index
    %c0_21 = arith.constant 0 : index
    %13 = vector.load %arg3[%c0_17, %c1_18, %c0_19, %c0_20, %c0_21] : memref<1x2x2x8x8xbf16, #tpu.memory_space<vmem>>, vector<1x1x1x8x8xbf16>
    %14 = vector.shape_cast %13 : vector<1x1x1x8x8xbf16> to vector<8x8xbf16>
    %cst_22 = arith.constant dense<0.000000e+00> : vector<8x289xf32>
    %15 = tpu.matmul %14, %12, %cst_22 {dimension_numbers = #tpu.dot_dimension_numbers<[1], [0], [0], [1], [0, 0, 1, 1], [], []>} : vector<8x8xbf16>, vector<8x289xbf16>, vector<8x289xf32> -> vector<8x289xf32>
    %16 = arith.addf %10, %15 : vector<8x289xf32>
    %c0_23 = arith.constant 0 : index
    %c0_24 = arith.constant 0 : index
    %c18 = arith.constant 18 : index
    %17 = vector.load %arg2[%c0_23, %c0_24, %c18] : memref<1x8x307xbf16, #tpu.memory_space<vmem>>, vector<1x8x289xbf16>
    %18 = vector.shape_cast %17 : vector<1x8x289xbf16> to vector<8x289xbf16>
    %c0_25 = arith.constant 0 : index
    %c1_26 = arith.constant 1 : index
    %c1_27 = arith.constant 1 : index
    %c0_28 = arith.constant 0 : index
    %c0_29 = arith.constant 0 : index
    %19 = vector.load %arg3[%c0_25, %c1_26, %c1_27, %c0_28, %c0_29] : memref<1x2x2x8x8xbf16, #tpu.memory_space<vmem>>, vector<1x1x1x8x8xbf16>
    %20 = vector.shape_cast %19 : vector<1x1x1x8x8xbf16> to vector<8x8xbf16>
    %cst_30 = arith.constant dense<0.000000e+00> : vector<8x289xf32>
    %21 = tpu.matmul %20, %18, %cst_30 {dimension_numbers = #tpu.dot_dimension_numbers<[1], [0], [0], [1], [0, 0, 1, 1], [], []>} : vector<8x8xbf16>, vector<8x289xbf16>, vector<8x289xf32> -> vector<8x289xf32>
    %22 = arith.addf %16, %21 : vector<8x289xf32>
    %c0_31 = arith.constant 0 : index
    %c0_32 = arith.constant 0 : index
    %23 = vector.load %arg4[%c0_31, %c0_32] : memref<8x1xf32, #tpu.memory_space<vmem>>, vector<8x1xf32>
    %24 = vector.broadcast %23 : vector<8x1xf32> to vector<8x289xf32>
    %25 = arith.addf %22, %24 : vector<8x289xf32>
    %c0_33 = arith.constant 0 : index
    %c0_34 = arith.constant 0 : index
    %c0_35 = arith.constant 0 : index
    %c0_36 = arith.constant 0 : index
    %26 = vector.load %arg5[%c0_33, %c0_34, %c0_35, %c0_36] : memref<1x1x8x289xf32, #tpu.memory_space<vmem>>, vector<1x1x8x289xf32>
    %27 = vector.shape_cast %26 : vector<1x1x8x289xf32> to vector<8x289xf32>
    %28 = vector.shape_cast %25 : vector<8x289xf32> to vector<1x1x8x289xf32>
    tpu.vector_store %arg5[%c0_33, %c0_34, %c0_35, %c0_36], %28 {strides = array<i32>} : memref<1x1x8x289xf32, #tpu.memory_space<vmem>>, vector<1x1x8x289xf32>,
    return
  }
  func.func @transform_0(%arg0: i32, %arg1: i32) -> (i32, i32, i32) {
    %c0_i32 = arith.constant 0 : i32
    %c0_i32_0 = arith.constant 0 : i32
    %c0_i32_1 = arith.constant 0 : i32
    return %arg0, %c0_i32, %c0_i32_0 : i32, i32, i32
  }
  func.func @transform_1(%arg0: i32, %arg1: i32) -> (i32, i32, i32, i32, i32) {
    %c0_i32 = arith.constant 0 : i32
    %c0_i32_0 = arith.constant 0 : i32
    %c0_i32_1 = arith.constant 0 : i32
    %c0_i32_2 = arith.constant 0 : i32
    %c0_i32_3 = arith.constant 0 : i32
    return %arg1, %c0_i32, %c0_i32_0, %c0_i32_1, %c0_i32_2 : i32, i32, i32, i32, i32
  }
  func.func @transform_2(%arg0: i32, %arg1: i32) -> (i32, i32) {
    %c0_i32 = arith.constant 0 : i32
    %c0_i32_0 = arith.constant 0 : i32
    %c0_i32_1 = arith.constant 0 : i32
    return %c0_i32, %c0_i32_0 : i32, i32
  }
  func.func @transform_3(%arg0: i32, %arg1: i32) -> (i32, i32, i32, i32) {
    %c0_i32 = arith.constant 0 : i32
    %c0_i32_0 = arith.constant 0 : i32
    %c0_i32_1 = arith.constant 0 : i32
    return %arg0, %arg1, %c0_i32, %c0_i32_0 : i32, i32, i32, i32
  }
}

</mosaic_0001>

<bundles_post_ra>
// kernel: block_c_forward.2
= control target key start
LH: loop header
LB: loop body
LE: loop exit
PB: predicated region body
PF: predicated region fallthrough
CT: control target
= control target key end

     0   :  { %s654_s18 = smov 0   ;;  %s656_s19 = smov 0   ;;  %s703_s0 = inlined_call_operand.vmem [shape: bf16[2,4,256], index: 0, kind: input, shape index: {}]   ;;  %s704_s1 = inlined_call_operand.vmem [shape: bf16[2,4,256], index: 1, kind: input, shape index: {}]   ;;  %s705_s2 = inlined_call_operand.vmem [shape: bf16[8,4], index: 2, kind: input, shape index: {}]   ;;  %s706_s3 = inlined_call_operand.vmem [shape: bf16[8,4], index: 3, kind: input, shape index: {}]   ;;  %s707_s4 = inlined_call_operand.vmem [shape: f32[8,1], index: 4, kind: input, shape index: {}]   ;;  %s708_s5 = inlined_call_operand.vmem [shape: bf16[2,8,256], index: 5, kind: output, shape index: {}]  }
   0x1   :  { %s658_s20 = smov 0  }
   0x2 LB: > { %s27_s21 = sadd.s32 1, %s617_s19  ;;  %p553_p0 = scmp.ge.s32.totalorder %s621_s20, 1  ;;  %s621_s20 = sphi %s658_s20, %s15_s20   ;;  %s617_s19 = sphi %s656_s19, %s710_s19   ;;  %s613_s18 = sphi %s654_s18, %s709_s18  }
   0x3   : > { %p29_p1 = scmp.ge.s32.totalorder %s27_s21, 2  ;;  %p225_p2 = scmp.lt.s32.totalorder %s621_s20, 3 }
   0x5   : > { %s712_s21 = smov (%p29_p1, %s27_s21), 0  ;;  %p226_p3 = pnand %p553_p0, %p225_p2 }
   0x6   : > { %p271_p4 = scmp.lt.s32.totalorder (!%p226_p3), %s613_s18, 1  ;;  %v623_v0 = vmov (!%p226_p3), 0   ;;  %v425_v1 = vld [vmem:[%s707_s4] sm:$0xff] (!%p226_p3)  ;;  %vm318_vm0 = vcmask (!%p226_p3), 1041408   ;;  %vm314_vm1 = vcmask (!%p226_p3), 31744  }
   0x7   : > { %229 = sbr.rel (%p226_p3) target bundleno = 247 (0xf7), region = 40  ;;  %357 = vmatprep.mubr.bf16.mxu0 (!%p226_p3), %v623_v0  ;;  %416 = vmatprep.mubr.bf16.mxu1 (!%p226_p3), %v623_v0  ;;  %v303_v8 = vld [vmem:[%s706_s3] sm:$0xf] (!%p226_p3) }
   0x8   : > { %598 = vset.pattern.permute.xlu0 (!%p226_p3), %v623_v0  ;;  %v301_v9 = vld [vmem:[%s705_s2] sm:$0xf] (!%p226_p3) }
   0x9   : > { %428 = vperm.xlu0 (!%p226_p3), %598, %v425_v1  }
   0xe   : > { %s714_s18 = smov (!%p271_p4, %s613_s18), 1 }
   0xf   : > { %s569_s24 = sshll.u32 %s714_s18, 2  ;;  %s571_s10 = sshll.u32 %s714_s18, 3 }
  0x10   : > { %s288_s27 = scalar_lea.vmem %s704_s1, %s569_s24  ;;  %s278_s30 = scalar_lea.vmem %s703_s0, %s569_s24 }
  0x11   : > { %v560_v2 = vld.sshfl [vmem:[%s288_s27] sm:$0x33 pattern:$0x76325410]  ;;  %s298_s13 = scalar_lea.vmem %s708_s5, %s571_s10 }
  0x12   : > { %v313_v3 = vcombine.high %v560_v2, %v560_v2  ;;  %v563_v4 = vld.sshfl [vmem:[%s278_s30] sm:$0x33 pattern:$0x76325410]  ;;  %v320_v5 = vsel %vm318_vm0, %v560_v2, 0 }
  0x13   : > { %v374_v6 = vcombine.high %v563_v4, %v563_v4  ;;  %v379_v7 = vsel %vm318_vm0, %v563_v4, 0 }
  0x14   : > { %561 = vmatprep.subr.msk.bf16.mxu0 %vm318_vm0, %v313_v3 }
  0x15   : > { %564 = vmatprep.subr.msk.bf16.mxu1 %vm318_vm0, %v374_v6  ;;  %326 = vmatpush1.bf16.msra.mxu0 %v320_v5 }
  0x16   : > { %385 = vmatpush1.bf16.msra.mxu1 %v379_v7 }
  0x18   : > { %562 = vmatmul.mubr.msk.bf16.vlgmr.msra.gmra.mrb[0].mxu0 %vm314_vm1, %v303_v8 }
  0x19   : > { %565 = vmatmul.mubr.msk.bf16.vlgmr.msra.gmra.mrb[0].mxu1 %vm314_vm1, %v301_v9 }
  0x88   : > { %v429_v11 = vpop.permute.xlu0 %428 }
  0xeb   : > { %v359_v10 = vpop.f32.mrb[0].mxu0 }
  0xec   : > { %v418_v12 = vpop.f32.mrb[0].mxu1  ;;  %v361_v13 = vpop.f32.mrb[1].mxu0 }
  0xed   : > { %v419_v14 = vadd.f32 %v418_v12, %v359_v10  ;;  %v420_v15 = vpop.f32.mrb[1].mxu1  ;;  %v363_v16 = vpop.f32.mrb[2].mxu0 }
  0xee   : > { %v421_v17 = vadd.f32 %v420_v15, %v361_v13  ;;  %v422_v18 = vpop.f32.mrb[2].mxu1  ;;  %v364_v19 = vpop.f32.mrb[3].mxu0 }
  0xef   : > { %v431_v20 = vadd.f32 %v429_v11, %v419_v14  ;;  %v423_v21 = vpop.f32.mrb[3].mxu1 }
  0xf0   : > { %v432_v22 = vadd.f32 %v429_v11, %v421_v17 }
  0xf1   : > { %v433_v23 = vmax.f32 %v431_v20, 0.0 }
  0xf2   : > { %v434_v24 = vmax.f32 %v432_v22, 0.0 }
  0xf4   : > { %v572_v25 = vpack.c.bf16 %v434_v24, %v433_v23 }
  0xf6   : > { %443 = vst [vmem:[%s298_s13] sm:$0xff] %v572_v25 }
  0xf7 PF: > { %s15_s20 = sadd.s32 1, %s621_s20   ;;  %s709_s18 = smov %s617_s19 }
  0xf8   : > { %p12_p5 = scmp.ge.s32.totalorder %s15_s20, 4   ;;  %s710_s19 = smov %s712_s21 }
  0xfa   :  { %14 = sbr.rel (!%p12_p5) target bundleno = 2 (0x2), region = 73 }

// kernel: block_c_forward.3
= control target key start
LH: loop header
LB: loop body
LE: loop exit
PB: predicated region body
PF: predicated region fallthrough
CT: control target
= control target key end

     0   :  { %s930_s12 = smov 0   ;;  %s932_s13 = smov 0   ;;  %s1048_s0 = inlined_call_operand.vmem [shape: bf16[2,8,307], index: 0, kind: input, shape index: {}]   ;;  %s1049_s1 = inlined_call_operand.vmem [shape: bf16[4,2,2,8,8], index: 1, kind: input, shape index: {}]   ;;  %s1050_s2 = inlined_call_operand.vmem [shape: f32[8,1], index: 2, kind: input, shape index: {}]   ;;  %s1051_s3 = inlined_call_operand.vmem [shape: f32[2,4,8,289], index: 3, kind: output, shape index: {}]  }
   0x1   :  { %s934_s14 = smov 0   ;;  %s936_s15 = smov 0  }
   0x2   :  { %s938_s16 = smov 0  }
   0x3 LB: > { %s22_s17 = sadd.s32 1, %s894_s14  ;;  %s25_s18 = sadd.s32 1, %s898_s15  ;;  %s902_s16 = sphi %s938_s16, %s13_s16   ;;  %s898_s15 = sphi %s936_s15, %s1055_s15   ;;  %s894_s14 = sphi %s934_s14, %s1054_s14   ;;  %s890_s13 = sphi %s932_s13, %s1053_s13   ;;  %s886_s12 = sphi %s930_s12, %s1052_s12  }
   0x4   : > { %p23_p0 = scmp.ge.s32.totalorder %s22_s17, 4  ;;  %p753_p1 = scmp.ge.s32.totalorder %s902_s16, 1 }
   0x5   : > { %p161_p2 = scmp.lt.s32.totalorder %s902_s16, 9 }
   0x6   : > { %s1057_s17 = smov (%p23_p0, %s22_s17), 0  ;;  %s1059_s18 = smov (!%p23_p0, %s25_s18), %s898_s15 }
   0x7   : > { %p162_p3 = pnand %p753_p1, %p161_p2  ;;  %p27_p4 = scmp.ge.s32.totalorder %s1059_s18, 2 }
   0x8   : > { %p194_p5 = scmp.lt.s32.totalorder (!%p162_p3), %s890_s13, 1  ;;  %v904_v0 = vmov (!%p162_p3), 0.0   ;;  %vm905_vm0 = vmmov (!%p162_p3), 0   ;;  %v906_v1 = vmov (!%p162_p3), 0   ;;  %s907_s23 = smov (!%p162_p3), 127   ;;  %v638_v6 = vld [vmem:[%s1050_s2] sm:$0xff] (!%p162_p3) }
   0x9   : > { %s1061_s18 = smov (%p27_p4, %s1059_s18), 0  ;;  %165 = sbr.rel (%p162_p3) target bundleno = 389 (0x185), region = 32 }
   0xa   : > { %787 = vmatprep.subr.bf16.mxu1 (!%p162_p3), %v904_v0  ;;  %789 = vmatprep.mubr.msk.bf16.mxu1 (!%p162_p3), %vm905_vm0, %v904_v0  ;;  %s908_s24 = smov (!%p162_p3), 111   ;;  %s909_s25 = smov (!%p162_p3), 110   ;;  %vm240_vm1 = vcmask (!%p162_p3), 1043456   ;;  %vm236_vm2 = vcmask (!%p162_p3), 64512   ;;  %vm233_vm3 = vcmask (!%p162_p3), 1039360   ;;  %vm432_vm4 = vcmask (!%p162_p3), 908288  }
   0xb   : > { %282 = vmatprep.mubr.bf16.mxu0 (!%p162_p3), %v906_v1  ;;  %859 = vset.pattern.permute.xlu1 (!%p162_p3), %v906_v1  ;;  %p199_p6 = scmp.lt.s32.totalorder (!%p162_p3), %s886_s12, 3  ;;  %vm539_vm5 = vcmask (!%p162_p3), 900096   ;;  %vm649_vm6 = vcmask (!%p162_p3), 269312  }
   0xc   : > { %860 = vset.pattern.permute.xlu0 (!%p162_p3), %v906_v1 }
  0x10   : > { %s1063_s13 = smov (!%p194_p5, %s890_s13), 1  ;;  %s1065_s12 = smov (!%p199_p6, %s886_s12), 3 }
  0x11   : > { %s811_s19 = smul.u32 12, %s1063_s13  ;;  %s778_s28 = sshll.u32 %s1065_s12, 4 }
  0x12   : > { %s987_s4 = scalar_lea.vmem %s1049_s1, %s778_s28  ;;  %s812_s5 = smul.u32 3, %s1065_s12 }
  0x13   : > { %s198_s22 = scalar_lea.vmem %s1048_s0, %s811_s19  ;;  %v758_v10 = vld [vmem:[%s987_s4 + $0x4] sm:$0xf]  ;;  %v216_v20 = vld [vmem:[%s987_s4] sm:$0xf]  ;;  %v768_v28 = vld [vmem:[%s987_s4 + $0x8] sm:$0xf] }
  0x14   : > { %v861_v2 = vld [vmem:[%s198_s22 + $0x8] ss:$0 sps:$4 sm:$0xff]   ;;  %v214_v3 = vld [vmem:[%s198_s22] sm:$0xff]  ;;  %v772_v33 = vld [vmem:[%s987_s4 + $0xc] sm:$0xf]  ;;  %s210_s6 = sadd.s32 %s812_s5, %s811_s19 }
  0x15   : > { %v759_v4 = vcombine.low %v214_v3, %v214_v3  ;;  %231 = vrot.lane.b32.xlu1 %v861_v2, %s907_s23  ;;  %v760_v5 = vcombine.high %v214_v3, %v214_v3  ;;  %v341_v11 = vsel %vm240_vm1, %v861_v2, 0  ;;  %s757_s7 = sshll.u32 %s210_s6, 3 }
  0x16   : > { %s212_s10 = scalar_lea.vmem %s1051_s3, %s757_s7 }
  0x17   : > { %227 = vrot.lane.b32.xlu0 %v759_v4, %s907_s23  ;;  %v335_v18 = vsel %vm240_vm1, %v759_v4, 0 }
  0x19   : > { %426 = vrot.lane.b32.xlu1 %v759_v4, %s908_s24 }
  0x1b   : > { %229 = vrot.lane.b32.xlu0 %v760_v5, %s907_s23 }
  0x1d   : > { %430 = vrot.lane.b32.xlu1 %v861_v2, %s908_s24 }
  0x1f   : > { %428 = vrot.lane.b32.xlu0 %v760_v5, %s908_s24 }
  0x21   : > { %535 = vrot.lane.b32.xlu1 %v760_v5, %s909_s25 }
  0x23   : > { %533 = vrot.lane.b32.xlu0 %v759_v4, %s909_s25 }
  0x25   : > { %641 = vperm.xlu1 %859, %v638_v6  }
  0x27   : > { %537 = vrot.lane.b32.xlu0 %v861_v2, %s909_s25 }
  0x87   : > { %v232_v7 = vpop.permute.xlu1 %231 }
  0x88   : > { %v248_v9 = vsel %vm240_vm1, %v232_v7, 0 }
  0x89   : > { %v228_v8 = vpop.permute.xlu0 %227  ;;  %788 = vmatpush3.bf16.msra.mxu1 %v248_v9 }
  0x8a   : > { %793 = vmatprep.subr.bf16.mxu1 %v904_v0 }
  0x8b   : > { %v427_v12 = vpop.permute.xlu1 %426 }
  0x8c   : > { %790 = vmatmul.mubr.msk.bf16.vlgmr.msra.gmra.mrb[0].mxu1 %vm236_vm2, %v758_v10 }
  0x8d   : > { %v230_v13 = vpop.permute.xlu0 %229  ;;  %794 = vmatpush3.bf16.msra.mxu1 %v341_v11  ;;  %795 = vmatprep.mubr.msk.bf16.mxu1 %vm905_vm0, %v904_v0 }
  0x8e   : > { %v235_v14 = vsel %vm233_vm3, %v230_v13, %v232_v7  ;;  %v234_v15 = vsel %vm233_vm3, %v228_v8, %v230_v13  ;;  %799 = vmatprep.subr.bf16.mxu1 %v904_v0 }
  0x8f   : > { %762 = vmatprep.subr.msk.bf16.mxu0 %vm240_vm1, %v235_v14  ;;  %v242_v16 = vsel %vm240_vm1, %v234_v15, 0  ;;  %v431_v17 = vpop.permute.xlu1 %430 }
  0x90   : > { %251 = vmatpush1.bf16.msra.mxu0 %v242_v16  ;;  %v445_v22 = vsel %vm240_vm1, %v431_v17, 0 }
  0x91   : > { %765 = vmatprep.subr.msk.bf16.mxu0 %vm240_vm1, %v760_v5  ;;  %v429_v19 = vpop.permute.xlu0 %428 }
  0x92   : > { %v434_v21 = vsel %vm432_vm4, %v429_v19, %v431_v17  ;;  %v433_v24 = vsel %vm432_vm4, %v427_v12, %v429_v19 }
  0x93   : > { %763 = vmatmul.mubr.msk.bf16.vlgmr.msra.gmra.mrb[0].mxu0 %vm236_vm2, %v758_v10  ;;  %v536_v25 = vpop.permute.xlu1 %535  ;;  %v439_v26 = vsel %vm240_vm1, %v433_v24, 0 }
  0x94   : > { %344 = vmatpush1.bf16.msra.mxu0 %v335_v18  ;;  %375 = vmatprep.mubr.bf16.mxu0 %v906_v1 }
  0x95   : > { %796 = vmatmul.mubr.msk.bf16.vlgmr.msra.gmra.mrb[4].mxu1 %vm236_vm2, %v216_v20  ;;  %769 = vmatprep.subr.msk.bf16.mxu0 %vm240_vm1, %v434_v21  ;;  %v534_v23 = vpop.permute.xlu0 %533 }
  0x96   : > { %800 = vmatpush3.bf16.msra.mxu1 %v445_v22  ;;  %801 = vmatprep.mubr.msk.bf16.mxu1 %vm905_vm0, %v904_v0  ;;  %v540_v31 = vsel %vm539_vm5, %v534_v23, %v536_v25 }
  0x97   : > { %805 = vmatprep.subr.bf16.mxu1 %v904_v0  ;;  %v546_v32 = vsel %vm240_vm1, %v540_v31, 0 }
  0x99   : > { %v538_v27 = vpop.permute.xlu0 %537 }
  0x9a   : > { %v541_v29 = vsel %vm539_vm5, %v536_v25, %v538_v27  ;;  %v552_v30 = vsel %vm240_vm1, %v538_v27, 0 }
  0x9b   : > { %766 = vmatmul.mubr.msk.bf16.vlgmr.msra.gmra.mrb[4].mxu0 %vm236_vm2, %v216_v20 }
  0x9c   : > { %448 = vmatpush1.bf16.msra.mxu0 %v439_v26  ;;  %479 = vmatprep.mubr.bf16.mxu0 %v906_v1 }
  0x9d   : > { %802 = vmatmul.mubr.msk.bf16.vlgmr.msra.gmra.mrb[8].mxu1 %vm236_vm2, %v768_v28  ;;  %773 = vmatprep.subr.msk.bf16.mxu0 %vm240_vm1, %v541_v29 }
  0x9e   : > { %806 = vmatpush3.bf16.msra.mxu1 %v552_v30  ;;  %807 = vmatprep.mubr.msk.bf16.mxu1 %vm905_vm0, %v904_v0 }
  0xa3   : > { %770 = vmatmul.mubr.msk.bf16.vlgmr.msra.gmra.mrb[8].mxu0 %vm236_vm2, %v768_v28 }
  0xa4   : > { %555 = vmatpush1.bf16.msra.mxu0 %v546_v32  ;;  %586 = vmatprep.mubr.bf16.mxu0 %v906_v1  ;;  %v642_v61 = vpop.permute.xlu1 %641 }
  0xa5   : > { %808 = vmatmul.mubr.msk.bf16.vlgmr.msra.gmra.mrb[12].mxu1 %vm236_vm2, %v772_v33 }
  0xab   : > { %774 = vmatmul.mubr.msk.bf16.vlgmr.msra.gmra.mrb[12].mxu0 %vm236_vm2, %v772_v33 }
 0x15f   : > { %v325_v34 = vpop.f32.mrb[0].mxu1 }
 0x160   : > { %v791_v35 = vpop.f32.mrb[1].mxu1 }
 0x161   : > { %v328_v36 = vpop.f32.mrb[2].mxu1 }
 0x162   : > { %v792_v37 = vpop.f32.mrb[3].mxu1 }
 0x166   : > { %v284_v38 = vpop.f32.mrb[0].mxu0 }
 0x167   : > { %v286_v39 = vpop.f32.mrb[1].mxu0 }
 0x168   : > { %v288_v40 = vpop.f32.mrb[2].mxu0  ;;  %v418_v41 = vpop.f32.mrb[4].mxu1 }
 0x169   : > { %v289_v42 = vpop.f32.mrb[3].mxu0  ;;  %v419_v43 = vadd.f32 %v418_v41, %v325_v34  ;;  %v797_v44 = vpop.f32.mrb[5].mxu1 }
 0x16a   : > { %v421_v45 = vpop.f32.mrb[6].mxu1 }
 0x16b   : > { %v798_v46 = vpop.f32.mrb[7].mxu1 }
 0x16e   : > { %v377_v47 = vpop.f32.mrb[4].mxu0 }
 0x16f   : > { %v378_v48 = vadd.f32 %v377_v47, %v284_v38  ;;  %v379_v49 = vpop.f32.mrb[5].mxu0 }
 0x170   : > { %v380_v50 = vadd.f32 %v379_v49, %v286_v39  ;;  %v381_v51 = vpop.f32.mrb[6].mxu0  ;;  %v522_v52 = vpop.f32.mrb[8].mxu1 }
 0x171   : > { %v382_v53 = vpop.f32.mrb[7].mxu0  ;;  %v530_v54 = vadd.f32 %v522_v52, %v419_v43  ;;  %v803_v55 = vpop.f32.mrb[9].mxu1 }
 0x172   : > { %v525_v56 = vpop.f32.mrb[10].mxu1 }
 0x173   : > { %v804_v57 = vpop.f32.mrb[11].mxu1 }
 0x176   : > { %v481_v58 = vpop.f32.mrb[8].mxu0 }
 0x177   : > { %v528_v59 = vadd.f32 %v481_v58, %v378_v48  ;;  %v483_v60 = vpop.f32.mrb[9].mxu0 }
 0x178   : > { %v529_v62 = vadd.f32 %v483_v60, %v380_v50  ;;  %v485_v63 = vpop.f32.mrb[10].mxu0  ;;  %v629_v0 = vpop.f32.mrb[12].mxu1 }
 0x179   : > { %v486_v1 = vpop.f32.mrb[11].mxu0  ;;  %v637_v2 = vadd.f32 %v629_v0, %v530_v54  ;;  %v809_v3 = vpop.f32.mrb[13].mxu1 }
 0x17a   : > { %v632_v4 = vpop.f32.mrb[14].mxu1 }
 0x17b   : > { %v646_v5 = vadd.f32 %v642_v61, %v637_v2  ;;  %v810_v6 = vpop.f32.mrb[15].mxu1 }
 0x17d   : > { %650 = vst.msk [vmem:[%s212_s10 + $0x10] sm:$0xff] %vm649_vm6, %v646_v5 }
 0x17e   : > { %v588_v7 = vpop.f32.mrb[12].mxu0 }
 0x17f   : > { %v635_v8 = vadd.f32 %v588_v7, %v528_v59  ;;  %v590_v9 = vpop.f32.mrb[13].mxu0 }
 0x180   : > { %v636_v10 = vadd.f32 %v590_v9, %v529_v62  ;;  %v592_v11 = vpop.f32.mrb[14].mxu0 }
 0x181   : > { %v644_v12 = vadd.f32 %v642_v61, %v635_v8  ;;  %v593_v13 = vpop.f32.mrb[15].mxu0 }
 0x182   : > { %v645_v14 = vadd.f32 %v642_v61, %v636_v10 }
 0x183   : > { %647 = vst [vmem:[%s212_s10] sm:$0xff] %v644_v12 }
 0x184   : > { %648 = vst [vmem:[%s212_s10 + $0x8] sm:$0xff] %v645_v14 }
 0x185 PF: > { %s13_s16 = sadd.s32 1, %s902_s16   ;;  %s1052_s12 = smov %s894_s14 }
 0x186   : > { %p10_p7 = scmp.ge.s32.totalorder %s13_s16, 10   ;;  %s1053_s13 = smov %s898_s15 }
 0x187   : > { %s1054_s14 = smov %s1057_s17  ;;  %s1055_s15 = smov %s1061_s18 }
 0x188   :  { %12 = sbr.rel (!%p10_p7) target bundleno = 3 (0x3), region = 68 }

</bundles_post_ra>
